<compile_context>
chip_gen: v7x
topology: tpu7x:2x2x1
jax: 0.10.0
libtpu: 0.0.40
codegen_flags: <defaults>
</compile_context>

<pallas_src>
import jax
import jax.numpy as jnp
from jax.experimental import pallas as pl
from jax.experimental.pallas import tpu as pltpu

CONT_WORDS_IN_SENTENCE = 25
DIM_SIZE_VECTOR = 25
HIDDEN = 256
NUM_CLASSES = 2
BN_EPS = 1e-5

LANE = 128       # lane width (last-dim alignment)
SUBLANE = 8      # f32 sublane alignment

W1_RESIDENT_LIMIT = 12 << 20   # keep w1 fully VMEM-resident only below this
TK_STREAM = 2048               # K tile (multiple of 128) when w1 is streamed
VMEM_TARGET = 48 << 20         # tile-sizing target; leaves headroom on v7x (64 MiB)


def _round_up(x, m):
    return (x + m - 1) // m * m


def _make_kernel(TK, D, mask_last_k, cast_dtype):
    """Build the fused kernel: Linear1 (BN folded) -> ReLU -> Linear2.

    mask_last_k: True iff x is read in K tiles and the last K tile is ragged
    (x is NOT padded along K, so its out-of-bounds columns must be zeroed).
    cast_dtype:  in-kernel compute dtype for the first matmul (e.g. bf16),
    or None to keep x's own dtype.
    """

    def kernel(x_ref, w1_ref, b1_ref, w2_ref, b2_ref, o_ref, acc_ref):
        k = pl.program_id(1)

        @pl.when(k == 0)
        def _init():
            acc_ref[...] = jnp.zeros_like(acc_ref)

        x = x_ref[...]
        if mask_last_k:
            # Zero columns past D so garbage (possibly NaN) lanes in the ragged
            # last K block cannot leak into the accumulation.
            col = jax.lax.broadcasted_iota(jnp.int32, x.shape, 1) + k * TK
            x = jnp.where(col < D, x, 0.0)
        if cast_dtype is not None:
            # In-kernel cast (VPU, hidden under the MXU) instead of a wrapper
            # pre-cast that would add an extra HBM round trip of x.
            x = x.astype(cast_dtype)

        # Linear 1 on the MXU, f32 accumulate.
        acc_ref[...] += jnp.dot(x, w1_ref[...], preferred_element_type=jnp.float32)

        @pl.when(k == pl.num_programs(1) - 1)
        def _epilogue():
            # Bias (BN already folded) + ReLU; Dropout(0.5) is identity at inference.
            h = jnp.maximum(acc_ref[...] + b1_ref[...], 0.0)
            # Linear 2 (tiny: 256 -> 2, padded to 128 lanes), f32.
            o_ref[...] = (jnp.dot(h, w2_ref[...], preferred_element_type=jnp.float32)
                          + b2_ref[...]).astype(o_ref.dtype)

    return kernel


def prepare_params(params, compute_dtype=jnp.float32):
    """One-time param prep: fold BN into Linear1, pick the K tiling, pad w2/b2.

    Call once and reuse the result for every spamham_forward call.
    """
    D = params["w1"].shape[0]
    itemsize = jnp.dtype(compute_dtype).itemsize
    Cp = _round_up(NUM_CLASSES, LANE)

    # Fold eval-mode BatchNorm1d into Linear1 (in f32, before any downcast).
    scale = params["gamma"] * jax.lax.rsqrt(params["running_var"] + BN_EPS)
    w1_f = params["w1"] * scale[None, :]
    b1_f = (params["b1"] - params["running_mean"]) * scale + params["beta"]

    if D * HIDDEN * itemsize <= W1_RESIDENT_LIMIT:
        # Small D: single K step, w1 stays unpadded and fully VMEM-resident.
        TK, Dp = D, D
        w1_p = w1_f.astype(compute_dtype)
    else:
        # Large D (many features): stream w1 in K tiles.  Zero-pad once here
        # (padded rows contribute nothing); x itself is never padded.
        TK = TK_STREAM
        Dp = _round_up(D, TK)
        w1_p = jnp.zeros((Dp, HIDDEN), compute_dtype).at[:D, :].set(
            w1_f.astype(compute_dtype))

    b1_p = b1_f.reshape(1, HIDDEN).astype(jnp.float32)
    w2_p = jnp.zeros((HIDDEN, Cp), jnp.float32).at[:, :NUM_CLASSES].set(params["w2"])
    b2_p = jnp.zeros((1, Cp), jnp.float32).at[:, :NUM_CLASSES].set(
        params["b2"].reshape(1, NUM_CLASSES))

    return {"w1": w1_p, "b1": b1_p, "w2": w2_p, "b2": b2_p,
            "D": D, "Dp": Dp, "TK": TK, "Cp": Cp,
            "compute_dtype": compute_dtype}


def _weight_step_bytes(TK, Cp, w1_itemsize):
    f = 4
    return TK * HIDDEN * w1_itemsize + HIDDEN * f + HIDDEN * Cp * f + Cp * f


def _choose_batch_tile(B, TK, Cp, w1_itemsize):
    """Largest batch tile (multiple of 8, <= 1024) whose double-buffered x/out
    tiles + weights + accumulator stay within the VMEM target."""
    f = 4
    budget = VMEM_TARGET - 2 * _weight_step_bytes(TK, Cp, w1_itemsize) - (2 << 20)
    per_row = 2 * (TK * f + Cp * f) + HIDDEN * f   # dbl-buffered x/out rows + f32 acc row
    cap = max(SUBLANE, (budget // per_row) // SUBLANE * SUBLANE)
    cap = min(cap, 1024)
    return int(min(cap, _round_up(B, SUBLANE)))


def _vmem_limit_bytes(TB, TK, Cp, w1_itemsize):
    f = 4
    stream = TB * TK * f + TB * Cp * f              # x tile + out tile
    total = (2 * stream                             # double-buffered streaming tiles
             + 2 * _weight_step_bytes(TK, Cp, w1_itemsize)
             + TB * HIDDEN * f                      # f32 accumulator scratch
             + (2 << 20))                           # slack
    return int(min(max(total, 4 << 20), 64 << 20))


def spamham_forward(x, prepared):
    """x: (B, num_features, 25, 25) float32. Returns logits (B, 2) float32."""
    cdtype = prepared["compute_dtype"]
    D, Dp, TK, Cp = prepared["D"], prepared["Dp"], prepared["TK"], prepared["Cp"]
    itemsize = jnp.dtype(cdtype).itemsize

    B = x.shape[0]
    x2 = x.reshape(B, -1)                           # Flatten; no pad, no copy, no cast
    assert x2.shape[1] == D

    n_k = Dp // TK

    TB = _choose_batch_tile(B, TK, Cp, itemsize)
    n_tiles = pl.cdiv(B, TB)
    if n_tiles > 1 and n_tiles % 2:
        # Prefer an even number of batch tiles so v7x's two TensorCores split
        # the "parallel" axis evenly (neutral on single-TC v5e/v6e).
        TB = max(SUBLANE, _round_up(pl.cdiv(B, n_tiles + 1), SUBLANE))
        n_tiles = pl.cdiv(B, TB)

    cast_dtype = cdtype if itemsize < 4 else None
    mask_last_k = (n_k > 1) and (Dp > D)
    kernel = _make_kernel(TK, D, mask_last_k, cast_dtype)

    grid_spec = pltpu.PrefetchScalarGridSpec(
        num_scalar_prefetch=0,
        grid=(n_tiles, n_k),                        # batch outer, K reduction last
        in_specs=[
            pl.BlockSpec((TB, TK), lambda i, k: (i, k)),       # x: streamed over batch/K
            pl.BlockSpec((TK, HIDDEN), lambda i, k: (k, 0)),   # w1: resident (n_k==1) or K-streamed
            pl.BlockSpec((1, HIDDEN), lambda i, k: (0, 0)),    # b1 (BN folded)
            pl.BlockSpec((HIDDEN, Cp), lambda i, k: (0, 0)),   # w2: VMEM-resident
            pl.BlockSpec((1, Cp), lambda i, k: (0, 0)),        # b2
        ],
        out_specs=pl.BlockSpec((TB, Cp), lambda i, k: (i, 0)),
        scratch_shapes=[pltpu.VMEM((TB, HIDDEN), jnp.float32)],
    )

    out = pl.pallas_call(
        kernel,
        out_shape=jax.ShapeDtypeStruct((B, Cp), jnp.float32),
        grid_spec=grid_spec,
        compiler_params=pltpu.CompilerParams(
            dimension_semantics=("parallel", "arbitrary"),
            vmem_limit_bytes=_vmem_limit_bytes(TB, TK, Cp, itemsize),
        ),
    )(x2, prepared["w1"], prepared["b1"], prepared["w2"], prepared["b2"])

    return out[:, :NUM_CLASSES]


def init_params(key, num_features):
    """Deterministic parameter init matching the PyTorch module's shapes."""
    D = num_features * CONT_WORDS_IN_SENTENCE * DIM_SIZE_VECTOR
    k1, k2, k3, k4 = jax.random.split(key, 4)
    bound1 = 1.0 / jnp.sqrt(D)
    bound2 = 1.0 / jnp.sqrt(HIDDEN)
    return {
        # stored as (in, out) = PyTorch weight.T
        "w1": jax.random.uniform(k1, (D, HIDDEN), jnp.float32, -bound1, bound1),
        "b1": jax.random.uniform(k2, (HIDDEN,), jnp.float32, -bound1, bound1),
        # BatchNorm1d defaults
        "gamma": jnp.ones((HIDDEN,), jnp.float32),
        "beta": jnp.zeros((HIDDEN,), jnp.float32),
        "running_mean": jnp.zeros((HIDDEN,), jnp.float32),
        "running_var": jnp.ones((HIDDEN,), jnp.float32),
        "w2": jax.random.uniform(k3, (HIDDEN, NUM_CLASSES), jnp.float32,
                                 -bound2, bound2),
        "b2": jax.random.uniform(k4, (NUM_CLASSES,), jnp.float32,
                                 -bound2, bound2),
    }


def reference_forward(x, params):
    """Pure-JAX reference of the same forward pass (for a sanity check)."""
    B = x.shape[0]
    h = x.reshape(B, -1) @ params["w1"] + params["b1"]
    h = (h - params["running_mean"]) / jnp.sqrt(params["running_var"] + BN_EPS)
    h = h * params["gamma"] + params["beta"]
    h = jnp.maximum(h, 0.0)
    return h @ params["w2"] + params["b2"]


if __name__ == "__main__":
    key = jax.random.PRNGKey(0)
    kx, kp = jax.random.split(key)

    num_features = 1
    batch = 2
    # input shaped like the dataloader output: (B, num_features, 25, 25)
    x = jax.random.normal(
        kx, (batch, num_features, CONT_WORDS_IN_SENTENCE, DIM_SIZE_VECTOR),
        dtype=jnp.float32)

    params = init_params(kp, num_features)
    ref = reference_forward(x, params)

    # f32 compute path (exact vs. reference).
    prep_f32 = prepare_params(params, compute_dtype=jnp.float32)
    logits = jax.block_until_ready(spamham_forward(x, prep_f32))
    assert logits.shape == (batch, NUM_CLASSES)
    assert jnp.allclose(logits, ref, atol=1e-4, rtol=1e-4), (logits, ref)

    # bf16 compute path (w1 stored bf16, x cast inside the kernel; f32 accumulate).
    prep_bf16 = prepare_params(params, compute_dtype=jnp.bfloat16)
    logits16 = jax.block_until_ready(spamham_forward(x, prep_bf16))
    assert logits16.shape == (batch, NUM_CLASSES)
    assert jnp.allclose(logits16, ref, atol=5e-2, rtol=5e-2), (logits16, ref)

    print("KERNEL_OK")
</pallas_src>

<mosaic_0001>
module attributes {stable_mosaic.version = 11 : i64} {
  func.func @kernel(%arg0: i32, %arg1: i32, %arg2: memref<8x625xf32, #tpu.memory_space<vmem>>, %arg3: memref<625x256xf32, #tpu.memory_space<vmem>>, %arg4: memref<1x256xf32, #tpu.memory_space<vmem>>, %arg5: memref<256x128xf32, #tpu.memory_space<vmem>>, %arg6: memref<1x128xf32, #tpu.memory_space<vmem>>, %arg7: memref<8x128xf32, #tpu.memory_space<vmem>>, %arg8: memref<8x256xf32, #tpu.memory_space<vmem>>) attributes {dimension_semantics = [#tpu.dimension_semantics<parallel>, #tpu.dimension_semantics<arbitrary>], iteration_bounds = array<i64: 1, 1>, scalar_prefetch = 0 : i64, scratch_operands = 1 : i64, tpu.core_type = #tpu.core_type<tc>, window_params = [{transform_indices = @transform_0, window_bounds = array<i64: 8, 625>}, {transform_indices = @transform_1, window_bounds = array<i64: 625, 256>}, {pipeline_mode = #tpu.pipeline_mode<synchronous>, transform_indices = @transform_2, window_bounds = array<i64: 1, 256>}, {pipeline_mode = #tpu.pipeline_mode<synchronous>, transform_indices = @transform_3, window_bounds = array<i64: 256, 128>}, {pipeline_mode = #tpu.pipeline_mode<synchronous>, transform_indices = @transform_4, window_bounds = array<i64: 1, 128>}, {transform_indices = @transform_5, window_bounds = array<i64: 8, 128>}]} {
    %c0_i32 = arith.constant 0 : i32
    %0 = arith.cmpi eq, %arg1, %c0_i32 : i32
    %1 = arith.extui %0 : i1 to i32
    %c0_i32_0 = arith.constant 0 : i32
    %2 = arith.cmpi ne, %1, %c0_i32_0 : i32
    scf.if %2 {
      %cst_10 = arith.constant 0.000000e+00 : f32
      %12 = vector.broadcast %cst_10 : f32 to vector<8x256xf32>
      %c0_11 = arith.constant 0 : index
      %c0_12 = arith.constant 0 : index
      %13 = vector.load %arg8[%c0_11, %c0_12] : memref<8x256xf32, #tpu.memory_space<vmem>>, vector<8x256xf32>
      tpu.vector_store %arg8[%c0_11, %c0_12], %12 {strides = array<i32>} : memref<8x256xf32, #tpu.memory_space<vmem>>, vector<8x256xf32>,
    } else {
    }
    %c0 = arith.constant 0 : index
    %c0_1 = arith.constant 0 : index
    %3 = vector.load %arg2[%c0, %c0_1] : memref<8x625xf32, #tpu.memory_space<vmem>>, vector<8x625xf32>
    %c0_2 = arith.constant 0 : index
    %c0_3 = arith.constant 0 : index
    %4 = vector.load %arg8[%c0_2, %c0_3] : memref<8x256xf32, #tpu.memory_space<vmem>>, vector<8x256xf32>
    %c0_4 = arith.constant 0 : index
    %c0_5 = arith.constant 0 : index
    %5 = vector.load %arg3[%c0_4, %c0_5] : memref<625x256xf32, #tpu.memory_space<vmem>>, vector<625x256xf32>
    %cst = arith.constant dense<0.000000e+00> : vector<8x256xf32>
    %6 = tpu.matmul %3, %5, %cst {dimension_numbers = #tpu.dot_dimension_numbers<[1], [0], [0], [1], [0, 0, 1, 1], [], []>} : vector<8x625xf32>, vector<625x256xf32>, vector<8x256xf32> -> vector<8x256xf32>
    %7 = arith.addf %4, %6 : vector<8x256xf32>
    %c0_6 = arith.constant 0 : index
    %c0_7 = arith.constant 0 : index
    %8 = vector.load %arg8[%c0_6, %c0_7] : memref<8x256xf32, #tpu.memory_space<vmem>>, vector<8x256xf32>
    tpu.vector_store %arg8[%c0_6, %c0_7], %7 {strides = array<i32>} : memref<8x256xf32, #tpu.memory_space<vmem>>, vector<8x256xf32>,
    %c0_i32_8 = arith.constant 0 : i32
    %9 = arith.cmpi eq, %arg1, %c0_i32_8 : i32
    %10 = arith.extui %9 : i1 to i32
    %c0_i32_9 = arith.constant 0 : i32
    %11 = arith.cmpi ne, %10, %c0_i32_9 : i32
    scf.if %11 {
      %c0_10 = arith.constant 0 : index
      %c0_11 = arith.constant 0 : index
      %12 = vector.load %arg8[%c0_10, %c0_11] : memref<8x256xf32, #tpu.memory_space<vmem>>, vector<8x256xf32>
      %c0_12 = arith.constant 0 : index
      %c0_13 = arith.constant 0 : index
      %13 = vector.load %arg4[%c0_12, %c0_13] : memref<1x256xf32, #tpu.memory_space<vmem>>, vector<1x256xf32>
      %14 = vector.broadcast %13 : vector<1x256xf32> to vector<8x256xf32>
      %15 = arith.addf %12, %14 : vector<8x256xf32>
      %cst_14 = arith.constant 0.000000e+00 : f32
      %16 = vector.broadcast %cst_14 : f32 to vector<8x256xf32>
      %17 = arith.maximumf %15, %16 : vector<8x256xf32>
      %c0_15 = arith.constant 0 : index
      %c0_16 = arith.constant 0 : index
      %18 = vector.load %arg5[%c0_15, %c0_16] : memref<256x128xf32, #tpu.memory_space<vmem>>, vector<256x128xf32>
      %cst_17 = arith.constant dense<0.000000e+00> : vector<8x128xf32>
      %19 = tpu.matmul %17, %18, %cst_17 {dimension_numbers = #tpu.dot_dimension_numbers<[1], [0], [0], [1], [0, 0, 1, 1], [], []>} : vector<8x256xf32>, vector<256x128xf32>, vector<8x128xf32> -> vector<8x128xf32>
      %c0_18 = arith.constant 0 : index
      %c0_19 = arith.constant 0 : index
      %20 = vector.load %arg6[%c0_18, %c0_19] : memref<1x128xf32, #tpu.memory_space<vmem>>, vector<1x128xf32>
      %21 = vector.broadcast %20 : vector<1x128xf32> to vector<8x128xf32>
      %22 = arith.addf %19, %21 : vector<8x128xf32>
      %c0_20 = arith.constant 0 : index
      %c0_21 = arith.constant 0 : index
      %23 = vector.load %arg7[%c0_20, %c0_21] : memref<8x128xf32, #tpu.memory_space<vmem>>, vector<8x128xf32>
      tpu.vector_store %arg7[%c0_20, %c0_21], %22 {strides = array<i32>} : memref<8x128xf32, #tpu.memory_space<vmem>>, vector<8x128xf32>,
    } else {
    }
    return
  }
  func.func @transform_0(%arg0: i32, %arg1: i32) -> (i32, i32) {
    %c0_i32 = arith.constant 0 : i32
    return %arg0, %arg1 : i32, i32
  }
  func.func @transform_1(%arg0: i32, %arg1: i32) -> (i32, i32) {
    %c0_i32 = arith.constant 0 : i32
    %c0_i32_0 = arith.constant 0 : i32
    return %arg1, %c0_i32 : i32, i32
  }
  func.func @transform_2(%arg0: i32, %arg1: i32) -> (i32, i32) {
    %c0_i32 = arith.constant 0 : i32
    %c0_i32_0 = arith.constant 0 : i32
    %c0_i32_1 = arith.constant 0 : i32
    return %c0_i32, %c0_i32_0 : i32, i32
  }
  func.func @transform_3(%arg0: i32, %arg1: i32) -> (i32, i32) {
    %c0_i32 = arith.constant 0 : i32
    %c0_i32_0 = arith.constant 0 : i32
    %c0_i32_1 = arith.constant 0 : i32
    return %c0_i32, %c0_i32_0 : i32, i32
  }
  func.func @transform_4(%arg0: i32, %arg1: i32) -> (i32, i32) {
    %c0_i32 = arith.constant 0 : i32
    %c0_i32_0 = arith.constant 0 : i32
    %c0_i32_1 = arith.constant 0 : i32
    return %c0_i32, %c0_i32_0 : i32, i32
  }
  func.func @transform_5(%arg0: i32, %arg1: i32) -> (i32, i32) {
    %c0_i32 = arith.constant 0 : i32
    %c0_i32_0 = arith.constant 0 : i32
    return %arg0, %c0_i32 : i32, i32
  }
}

</mosaic_0001>

<bundles_post_ra>
// kernel: tpu_custom_call.1
= control target key start
LH: loop header
LB: loop body
LE: loop exit
PB: predicated region body
PF: predicated region fallthrough
CT: control target
= control target key end

     0   :  { %10 = vsyncpa [#allocation4], 0  ;;  %s1151_s0 = inlined_call_operand.hbm [shape: f32[2,625], index: 0, kind: input, shape index: {}]   ;;  %s1152_s1 = inlined_call_operand.hbm [shape: f32[625,256], index: 1, kind: input, shape index: {}]   ;;  %s1153_s2 = inlined_call_operand.vmem [shape: f32[1,256], index: 2, kind: input, shape index: {}]   ;;  %s1154_s3 = inlined_call_operand.hbm [shape: f32[256,128], index: 3, kind: input, shape index: {}]   ;;  %s1155_s4 = inlined_call_operand.vmem [shape: f32[1,128], index: 4, kind: input, shape index: {}]   ;;  %s1156_s5 = inlined_call_operand.hbm [shape: f32[2,128], index: 5, kind: output, shape index: {}]  }
   0x1   :  { %11 = vsyncpa [#allocation7], 0 }
   0x2   :  { %12 = vsyncpa [#allocation5], 0 }
   0x3   :  { %17 = vsyncadd [#allocation4], 480  ;;  %s1024_s18 = smov [#allocation6]   ;;  %s930_s22 = scalar_lea.hbm %s1152_s1, 20224 }
   0x4   :  { %s30_s19 = sshll.u32 %s1024_s18, 4  ;;  %p931_p0 = scmp.ne.s32.totalorder %s1152_s1, %s930_s22  ;;  %s31_s19 = int_to_ptr.vmem [resolvable:$true] %s30_s19 }
   0x5   :  { %p934_p1 = scmp.lt.u32.totalorder %s930_s22, %s1152_s1 }
   0x7   :  { %p936_p2 = pnand %p934_p1, %p931_p0 }
   0x9   :  { %939 = shalt.err (!%p936_p2)
}
   0xa   :  { %s940_s27 = scalar_lea.vmem %s31_s19, 20224  ;;  %p945_p4 = scmp.lt.s32.totalorder %s31_s19, %s31_s19 }
   0xb   :  { %p941_p3 = scmp.ne.s32.totalorder %s31_s19, %s940_s27  ;;  %p946_p5 = scmp.lt.s32.totalorder %s940_s27, %s940_s27 }
   0xd   :  { %p947_p6 = por %p946_p5, %p945_p4 }
   0xf   :  { %p948_p7 = pnand %p947_p6, %p941_p3 }
  0x11   :  { %951 = shalt.err (!%p948_p7)
}
  0x12   :  { %s1025_s28 = smov 256   ;;  %s1026_s29 = smov 16  }
  0x13   :  { %36 = dma.hbm_to_vmem [thread:$0]  %s1152_s1, 20224, %s31_s19, [#allocation7], %s1025_s28, %s1025_s28, %s1026_s29  }
  0x14   :  { %s1027_s7 = smov [#allocation3]   ;;  %s952_s11 = scalar_lea.hbm %s1151_s0, 160 }
  0x15   :  { %s18_s8 = sshll.u32 %s1027_s7, 4  ;;  %p953_p8 = scmp.ne.s32.totalorder %s1151_s0, %s952_s11  ;;  %s19_s8 = int_to_ptr.vmem [resolvable:$true] %s18_s8 }
  0x16   :  { %p956_p9 = scmp.lt.u32.totalorder %s952_s11, %s1151_s0 }
  0x18   :  { %p958_p10 = pnand %p956_p9, %p953_p8 }
  0x1a   :  { %961 = shalt.err (!%p958_p10)
}
  0x1b   :  { %s962_s16 = scalar_lea.vmem %s19_s8, 160  ;;  %s966_s1 = scalar_lea.vmem %s19_s8, 640 }
  0x1c   :  { %p963_p11 = scmp.ne.s32.totalorder %s19_s8, %s962_s16  ;;  %p967_p12 = scmp.lt.s32.totalorder %s19_s8, %s19_s8 }
  0x1d   :  { %p968_p13 = scmp.lt.s32.totalorder %s966_s1, %s962_s16 }
  0x1f   :  { %p969_p0 = por %p968_p13, %p967_p12 }
  0x21   :  { %p970_p1 = pnand %p969_p0, %p963_p11 }
  0x23   :  { %973 = shalt.err (!%p970_p1)
}
  0x24   :  { %s1028_s17 = smov 160   ;;  %s1029_s18 = smov 10  }
  0x25   :  { %24 = dma.hbm_to_vmem [thread:$0]  %s1151_s0, 160, %s19_s8, [#allocation4], %s1028_s17, %s1028_s17, %s1029_s18  }
  0x26   :  { %s1030_s21 = smov [#allocation8]   ;;  %s974_s25 = scalar_lea.hbm %s1154_s3, 4096 }
  0x27   :  { %s44_s22 = sshll.u32 %s1030_s21, 4  ;;  %p975_p2 = scmp.ne.s32.totalorder %s1154_s3, %s974_s25  ;;  %s45_s22 = int_to_ptr.vmem [resolvable:$true] %s44_s22 }
  0x28   :  { %p978_p3 = scmp.lt.u32.totalorder %s974_s25, %s1154_s3 }
  0x2a   :  { %p980_p4 = pnand %p978_p3, %p975_p2 }
  0x2c   :  { %983 = shalt.err (!%p980_p4)
}
  0x2d   :  { %s984_s30 = scalar_lea.vmem %s45_s22, 4096  ;;  %p989_p6 = scmp.lt.s32.totalorder %s45_s22, %s45_s22 }
  0x2e   :  { %p985_p5 = scmp.ne.s32.totalorder %s45_s22, %s984_s30  ;;  %p990_p7 = scmp.lt.s32.totalorder %s984_s30, %s984_s30 }
  0x30   :  { %p991_p8 = por %p990_p7, %p989_p6 }
  0x32   :  { %p992_p9 = pnand %p991_p8, %p985_p5 }
  0x34   :  { %995 = shalt.err (!%p992_p9)
}
  0x35   :  { %s1031_s0 = smov 128   ;;  %s1032_s6 = smov 8  }
  0x36   :  { %50 = dma.hbm_to_vmem [thread:$0]  %s1154_s3, 4096, %s45_s22, [#allocation7], %s1031_s0, %s1031_s0, %s1032_s6  }
  0x37   :  { %1018 = dma.done.wait [#allocation4], 640  }
  0x38   :  { %1019 = vsyncadd [#allocation4], 4294966656 }
  0x39   :  { %1020 = dma.done.wait [#allocation7], 24320  }
  0x3a   :  { %1021 = vsyncadd [#allocation7], 4294942976  ;;  %v143_v0 = vld [vmem:[#allocation6 + $0x208] sm:$0xff]  ;;  %v145_v1 = vld [vmem:[#allocation6 + $0x218] sm:$0xff]  ;;  %vm304_vm0 = vcmask 1040384   ;;  %vm301_vm1 = vcmask 924672  }
  0x3b   :  { %v142_v2 = vld [vmem:[#allocation6 + $0x200] sm:$0xff]  ;;  %v780_v3 = vpack.c.bf16 %v145_v1, %v143_v0  ;;  %v144_v4 = vld [vmem:[#allocation6 + $0x210] sm:$0xff]  ;;  %v147_v5 = vld [vmem:[#allocation6 + $0x228] sm:$0xff] }
  0x3c   :  { %v149_v6 = vld [vmem:[#allocation6 + $0x238] sm:$0xff]  ;;  %v782_v7 = vpack.c.bf16 %v144_v4, %v142_v2  ;;  %v146_v9 = vld [vmem:[#allocation6 + $0x220] sm:$0xff]  ;;  %v148_v10 = vld [vmem:[#allocation6 + $0x230] sm:$0xff] }
  0x3d   :  { %v784_v8 = vpack.c.bf16 %v149_v6, %v147_v5  ;;  %v151_v11 = vld [vmem:[#allocation6 + $0x248] sm:$0xff]  ;;  %781 = vmatprep.subr.bf16.mxu0 %v780_v3  ;;  %v153_v12 = vld [vmem:[#allocation6 + $0x258] sm:$0xff]  ;;  %v786_v13 = vpack.c.bf16 %v148_v10, %v146_v9  ;;  %v150_v15 = vld [vmem:[#allocation6 + $0x240] sm:$0xff] }
  0x3e   :  { %783 = vmatpush1.bf16.msra.mxu0 %v782_v7  ;;  %v788_v14 = vpack.c.bf16 %v153_v12, %v151_v11  ;;  %v152_v16 = vld [vmem:[#allocation6 + $0x250] sm:$0xff]  ;;  %v155_v17 = vld [vmem:[#allocation6 + $0x268] sm:$0xff]  ;;  %v157_v18 = vld [vmem:[#allocation6 + $0x278] sm:$0xff]  ;;  %v1033_v11 = vmov 1983009808  }
  0x3f   :  { %785 = vmatprep.subr.bf16.mxu0 %v784_v8  ;;  %v790_v19 = vpack.c.bf16 %v152_v16, %v150_v15  ;;  %v792_v20 = vpack.c.bf16 %v157_v18, %v155_v17  ;;  %v154_v21 = vld [vmem:[#allocation6 + $0x260] sm:$0xff]  ;;  %v156_v22 = vld [vmem:[#allocation6 + $0x270] sm:$0xff]  ;;  %v159_v23 = vld [vmem:[#allocation6 + $0x288] sm:$0xff]  ;;  %v249_v12 = vunpack.c.l.s4 %v1033_v11 }
  0x40   :  { %v161_v24 = vld [vmem:[#allocation6 + $0x298] sm:$0xff]  ;;  %v79_v25 = vld [vmem:[#allocation6 + $0x8] sm:$0xff]  ;;  %v78_v28 = vld [vmem:[#allocation6] sm:$0xff]  ;;  %v794_v30 = vpack.c.bf16 %v156_v22, %v154_v21 }
  0x41   :  { %v81_v26 = vld [vmem:[#allocation6 + $0x18] sm:$0xff]  ;;  %v80_v29 = vld [vmem:[#allocation6 + $0x10] sm:$0xff]  ;;  %v158_v31 = vld [vmem:[#allocation6 + $0x280] sm:$0xff]  ;;  %v796_v34 = vpack.c.bf16 %v161_v24, %v159_v23 }
  0x42   :  { %787 = vmatpush1.bf16.msra.mxu0 %v786_v13  ;;  %v716_v27 = vpack.c.bf16 %v81_v26, %v79_v25  ;;  %v718_v32 = vpack.c.bf16 %v80_v29, %v78_v28  ;;  %v83_v33 = vld [vmem:[#allocation6 + $0x28] sm:$0xff]  ;;  %v160_v35 = vld [vmem:[#allocation6 + $0x290] sm:$0xff]  ;;  %v85_v37 = vld [vmem:[#allocation6 + $0x38] sm:$0xff]  ;;  %v251_v13 = vlaneseq  ;;  %v250_v26 = vunpack.c.0.s8 %v249_v12 }
  0x43   :  { %789 = vmatprep.subr.bf16.mxu0 %v788_v14  ;;  %v163_v36 = vld [vmem:[#allocation6 + $0x2a8] sm:$0xff]  ;;  %v165_v38 = vld [vmem:[#allocation6 + $0x2b8] sm:$0xff]  ;;  %v720_v39 = vpack.c.bf16 %v85_v37, %v83_v33  ;;  %v82_v40 = vld [vmem:[#allocation6 + $0x20] sm:$0xff]  ;;  %v798_v45 = vpack.c.bf16 %v160_v35, %v158_v31 }
  0x44   :  { %717 = vmatprep.subr.bf16.mxu1 %v716_v27  ;;  %v84_v41 = vld [vmem:[#allocation6 + $0x30] sm:$0xff]  ;;  %v87_v43 = vld [vmem:[#allocation6 + $0x48] sm:$0xff]  ;;  %v89_v44 = vld [vmem:[#allocation6 + $0x58] sm:$0xff]  ;;  %v800_v49 = vpack.c.bf16 %v165_v38, %v163_v36  ;;  %v1104_v27 = vshrl.u32 %v251_v13, 7 }
  0x45   :  { %719 = vmatpush1.bf16.msra.mxu1 %v718_v32  ;;  %v722_v42 = vpack.c.bf16 %v84_v41, %v82_v40  ;;  %v162_v46 = vld [vmem:[#allocation6 + $0x2a0] sm:$0xff]  ;;  %v724_v47 = vpack.c.bf16 %v89_v44, %v87_v43  ;;  %v164_v50 = vld [vmem:[#allocation6 + $0x2b0] sm:$0xff]  ;;  %v167_v51 = vld [vmem:[#allocation6 + $0x2c8] sm:$0xff] }
  0x46   :  { %791 = vmatpush1.bf16.msra.mxu0 %v790_v19  ;;  %721 = vmatprep.subr.bf16.mxu1 %v720_v39  ;;  %v86_v48 = vld [vmem:[#allocation6 + $0x40] sm:$0xff]  ;;  %v88_v52 = vld [vmem:[#allocation6 + $0x50] sm:$0xff]  ;;  %v169_v53 = vld [vmem:[#allocation6 + $0x2d8] sm:$0xff]  ;;  %v802_v60 = vpack.c.bf16 %v164_v50, %v162_v46  ;;  %v1107_v43 = vsub.s32 %v250_v26, %v1104_v27 }
  0x47   :  { %793 = vmatprep.subr.bf16.mxu0 %v792_v20  ;;  %v726_v54 = vpack.c.bf16 %v88_v52, %v86_v48  ;;  %v91_v55 = vld [vmem:[#allocation6 + $0x68] sm:$0xff]  ;;  %v93_v56 = vld [vmem:[#allocation6 + $0x78] sm:$0xff]  ;;  %v90_v58 = vld [vmem:[#allocation6 + $0x60] sm:$0xff]  ;;  %v804_v62 = vpack.c.bf16 %v169_v53, %v167_v51 }
  0x48   :  { %v728_v57 = vpack.c.bf16 %v93_v56, %v91_v55  ;;  %v92_v59 = vld [vmem:[#allocation6 + $0x70] sm:$0xff]  ;;  %v95_v61 = vld [vmem:[#allocation6 + $0x88] sm:$0xff]  ;;  %v166_v63 = vld [vmem:[#allocation6 + $0x2c0] sm:$0xff] }
  0x49   :  { %723 = vmatpush1.bf16.msra.mxu1 %v722_v42  ;;  %v168_v0 = vld [vmem:[#allocation6 + $0x2d0] sm:$0xff]  ;;  %v97_v1 = vld [vmem:[#allocation6 + $0x98] sm:$0xff]  ;;  %v171_v2 = vld [vmem:[#allocation6 + $0x2e8] sm:$0xff]  ;;  %v730_v4 = vpack.c.bf16 %v92_v59, %v90_v58 }
  0x4a   :  { %795 = vmatpush1.bf16.msra.mxu0 %v794_v30  ;;  %725 = vmatprep.subr.bf16.mxu1 %v724_v47  ;;  %v173_v3 = vld [vmem:[#allocation6 + $0x2f8] sm:$0xff]  ;;  %v732_v5 = vpack.c.bf16 %v97_v1, %v95_v61  ;;  %v94_v6 = vld [vmem:[#allocation6 + $0x80] sm:$0xff]  ;;  %v96_v7 = vld [vmem:[#allocation6 + $0x90] sm:$0xff]  ;;  %v806_v8 = vpack.c.bf16 %v168_v0, %v166_v63 }
  0x4b   :  { %797 = vmatprep.subr.bf16.mxu0 %v796_v34  ;;  %v99_v9 = vld [vmem:[#allocation6 + $0xa8] sm:$0xff]  ;;  %v101_v10 = vld [vmem:[#allocation6 + $0xb8] sm:$0xff]  ;;  %v808_v14 = vpack.c.bf16 %v173_v3, %v171_v2  ;;  %v170_v15 = vld [vmem:[#allocation6 + $0x2e0] sm:$0xff]  ;;  %v734_v19 = vpack.c.bf16 %v96_v7, %v94_v6 }
  0x4c   :  { %v172_v16 = vld [vmem:[#allocation6 + $0x2f0] sm:$0xff]  ;;  %v175_v17 = vld [vmem:[#allocation6 + $0x308] sm:$0xff]  ;;  %v177_v18 = vld [vmem:[#allocation6 + $0x318] sm:$0xff]  ;;  %v736_v20 = vpack.c.bf16 %v101_v10, %v99_v9 }
  0x4d   :  { %727 = vmatpush1.bf16.msra.mxu1 %v726_v54  ;;  %v98_v21 = vld [vmem:[#allocation6 + $0xa0] sm:$0xff]  ;;  %v100_v22 = vld [vmem:[#allocation6 + $0xb0] sm:$0xff]  ;;  %v810_v23 = vpack.c.bf16 %v172_v16, %v170_v15  ;;  %v103_v24 = vld [vmem:[#allocation6 + $0xc8] sm:$0xff]  ;;  %v812_v28 = vpack.c.bf16 %v177_v18, %v175_v17 }
  0x4e   :  { %799 = vmatpush1.bf16.msra.mxu0 %v798_v45  ;;  %729 = vmatprep.subr.bf16.mxu1 %v728_v57  ;;  %v105_v25 = vld [vmem:[#allocation6 + $0xd8] sm:$0xff]  ;;  %v174_v29 = vld [vmem:[#allocation6 + $0x300] sm:$0xff]  ;;  %v176_v30 = vld [vmem:[#allocation6 + $0x310] sm:$0xff]  ;;  %v738_v33 = vpack.c.bf16 %v100_v22, %v98_v21 }
  0x4f   :  { %801 = vmatprep.subr.bf16.mxu0 %v800_v49  ;;  %v179_v31 = vld [vmem:[#allocation6 + $0x328] sm:$0xff]  ;;  %v181_v32 = vld [vmem:[#allocation6 + $0x338] sm:$0xff]  ;;  %v178_v34 = vld [vmem:[#allocation6 + $0x320] sm:$0xff]  ;;  %v740_v36 = vpack.c.bf16 %v105_v25, %v103_v24  ;;  %v814_v39 = vpack.c.bf16 %v176_v30, %v174_v29 }
  0x50   :  { %v180_v35 = vld [vmem:[#allocation6 + $0x330] sm:$0xff]  ;;  %v102_v37 = vld [vmem:[#allocation6 + $0xc0] sm:$0xff]  ;;  %v183_v40 = vld [vmem:[#allocation6 + $0x348] sm:$0xff]  ;;  %v816_v44 = vpack.c.bf16 %v181_v32, %v179_v31 }
  0x51   :  { %731 = vmatpush1.bf16.msra.mxu1 %v730_v4  ;;  %v104_v38 = vld [vmem:[#allocation6 + $0xd0] sm:$0xff]  ;;  %v107_v41 = vld [vmem:[#allocation6 + $0xe8] sm:$0xff]  ;;  %v109_v42 = vld [vmem:[#allocation6 + $0xf8] sm:$0xff]  ;;  %v818_v52 = vpack.c.bf16 %v180_v35, %v178_v34 }
  0x52   :  { %803 = vmatpush1.bf16.msra.mxu0 %v802_v60  ;;  %733 = vmatprep.subr.bf16.mxu1 %v732_v5  ;;  %v185_v45 = vld [vmem:[#allocation6 + $0x358] sm:$0xff]  ;;  %v742_v46 = vpack.c.bf16 %v104_v38, %v102_v37  ;;  %v744_v48 = vpack.c.bf16 %v109_v42, %v107_v41  ;;  %v106_v49 = vld [vmem:[#allocation6 + $0xe0] sm:$0xff]  ;;  %v108_v50 = vld [vmem:[#allocation6 + $0xf0] sm:$0xff] }
  0x53   :  { %805 = vmatprep.subr.bf16.mxu0 %v804_v62  ;;  %v922_v47 = vld [vmem:[#allocation3 + $0x4] ss:$10 sps:$4 sm:$0xff]   ;;  %v820_v56 = vpack.c.bf16 %v185_v45, %v183_v40  ;;  %v184_v58 = vld [vmem:[#allocation6 + $0x350] sm:$0xff]  ;;  %v746_v62 = vpack.c.bf16 %v108_v50, %v106_v49 }
  0x54   :  { %v924_v51 = vld [vmem:[#allocation3 + $0x18] ss:$10 sps:$4 sm:$0xff]   ;;  %v111_v53 = vld [vmem:[#allocation6 + $0x108] sm:$0xff]  ;;  %v1110_v55 = vrot.slane %v922_v47, %v1107_v43  ;;  %v182_v57 = vld [vmem:[#allocation6 + $0x340] sm:$0xff] }
  0x55   :  { %735 = vmatpush1.bf16.msra.mxu1 %v734_v19  ;;  %v113_v54 = vld [vmem:[#allocation6 + $0x118] sm:$0xff]  ;;  %v1113_v59 = vrot.slane %v924_v51, %v1107_v43  ;;  %v187_v60 = vld [vmem:[#allocation6 + $0x368] sm:$0xff]  ;;  %v110_v0 = vld [vmem:[#allocation6 + $0x100] sm:$0xff]  ;;  %v822_v3 = vpack.c.bf16 %v184_v58, %v182_v57 }
  0x56   :  { %807 = vmatpush1.bf16.msra.mxu0 %v806_v8  ;;  %737 = vmatprep.subr.bf16.mxu1 %v736_v20  ;;  %v189_v61 = vld [vmem:[#allocation6 + $0x378] sm:$0xff]  ;;  %v748_v63 = vpack.c.bf16 %v113_v54, %v111_v53  ;;  %v112_v1 = vld [vmem:[#allocation6 + $0x110] sm:$0xff]  ;;  %v115_v4 = vld [vmem:[#allocation6 + $0x128] sm:$0xff] }
  0x57   :  { %809 = vmatprep.subr.bf16.mxu0 %v808_v14  ;;  %v279_v2 = vcombine.high %v1110_v55, %v1113_v59  ;;  %v117_v5 = vld [vmem:[#allocation6 + $0x138] sm:$0xff]  ;;  %v824_v6 = vpack.c.bf16 %v189_v61, %v187_v60  ;;  %v186_v7 = vld [vmem:[#allocation6 + $0x360] sm:$0xff]  ;;  %v188_v8 = vld [vmem:[#allocation6 + $0x370] sm:$0xff]  ;;  %v750_v11 = vpack.c.bf16 %v112_v1, %v110_v0 }
  0x58   :  { %v191_v9 = vld [vmem:[#allocation6 + $0x388] sm:$0xff]  ;;  %v193_v10 = vld [vmem:[#allocation6 + $0x398] sm:$0xff]  ;;  %v752_v12 = vpack.c.bf16 %v117_v5, %v115_v4  ;;  %v114_v13 = vld [vmem:[#allocation6 + $0x120] sm:$0xff]  ;;  %v826_v15 = vpack.c.bf16 %v188_v8, %v186_v7 }
  0x59   :  { %739 = vmatpush1.bf16.msra.mxu1 %v738_v33  ;;  %446 = vmatprep.mubr.f32.mxu0 %v279_v2  ;;  %v116_v14 = vld [vmem:[#allocation6 + $0x130] sm:$0xff]  ;;  %v119_v16 = vld [vmem:[#allocation6 + $0x148] sm:$0xff]  ;;  %v121_v17 = vld [vmem:[#allocation6 + $0x158] sm:$0xff]  ;;  %v828_v18 = vpack.c.bf16 %v193_v10, %v191_v9 }
  0x5a   :  { %811 = vmatpush1.bf16.msra.mxu0 %v810_v23  ;;  %741 = vmatprep.subr.bf16.mxu1 %v740_v36  ;;  %v190_v19 = vld [vmem:[#allocation6 + $0x380] sm:$0xff]  ;;  %v192_v20 = vld [vmem:[#allocation6 + $0x390] sm:$0xff]  ;;  %v195_v21 = vld [vmem:[#allocation6 + $0x3a8] sm:$0xff]  ;;  %v754_v23 = vpack.c.bf16 %v116_v14, %v114_v13  ;;  %v756_v24 = vpack.c.bf16 %v121_v17, %v119_v16  ;;  %v278_v17 = vcombine.low %v1110_v55, %v1113_v59 }
  0x5b   :  { %813 = vmatprep.subr.bf16.mxu0 %v812_v28  ;;  %v197_v22 = vld [vmem:[#allocation6 + $0x3b8] sm:$0xff]  ;;  %v118_v25 = vld [vmem:[#allocation6 + $0x140] sm:$0xff]  ;;  %v120_v26 = vld [vmem:[#allocation6 + $0x150] sm:$0xff]  ;;  %v830_v28 = vpack.c.bf16 %v192_v20, %v190_v19 }
  0x5c   :  { %v123_v29 = vld [vmem:[#allocation6 + $0x168] sm:$0xff]  ;;  %v125_v30 = vld [vmem:[#allocation6 + $0x178] sm:$0xff]  ;;  %v832_v31 = vpack.c.bf16 %v197_v22, %v195_v21  ;;  %v194_v32 = vld [vmem:[#allocation6 + $0x3a0] sm:$0xff]  ;;  %v758_v36 = vpack.c.bf16 %v120_v26, %v118_v25 }
  0x5d   :  { %743 = vmatpush1.bf16.msra.mxu1 %v742_v46  ;;  %v196_v33 = vld [vmem:[#allocation6 + $0x3b0] sm:$0xff]  ;;  %v199_v34 = vld [vmem:[#allocation6 + $0x3c8] sm:$0xff]  ;;  %v201_v35 = vld [vmem:[#allocation6 + $0x3d8] sm:$0xff]  ;;  %v760_v38 = vpack.c.bf16 %v125_v30, %v123_v29 }
  0x5e   :  { %815 = vmatpush1.bf16.msra.mxu0 %v814_v39  ;;  %745 = vmatprep.subr.bf16.mxu1 %v744_v48  ;;  %v198_v37 = vld [vmem:[#allocation6 + $0x3c0] sm:$0xff]  ;;  %v124_v40 = vld [vmem:[#allocation6 + $0x170] sm:$0xff]  ;;  %v834_v41 = vpack.c.bf16 %v196_v33, %v194_v32  ;;  %v129_v45 = vld [vmem:[#allocation6 + $0x198] sm:$0xff]  ;;  %v836_v46 = vpack.c.bf16 %v201_v35, %v199_v34  ;;  %v1034_v33 = vmov 0.0  }
  0x5f   :  { %817 = vmatprep.subr.bf16.mxu0 %v816_v44  ;;  %v122_v39 = vld [vmem:[#allocation6 + $0x160] sm:$0xff]  ;;  %v200_v42 = vld [vmem:[#allocation6 + $0x3d0] sm:$0xff]  ;;  %v127_v44 = vld [vmem:[#allocation6 + $0x188] sm:$0xff] }
  0x60   :  { %v203_v47 = vld [vmem:[#allocation6 + $0x3e8] sm:$0xff]  ;;  %v205_v48 = vld [vmem:[#allocation6 + $0x3f8] sm:$0xff]  ;;  %v126_v49 = vld [vmem:[#allocation6 + $0x180] sm:$0xff]  ;;  %v762_v50 = vpack.c.bf16 %v124_v40, %v122_v39  ;;  %v764_v54 = vpack.c.bf16 %v129_v45, %v127_v44  ;;  %v838_v57 = vpack.c.bf16 %v200_v42, %v198_v37 }
  0x61   :  { %747 = vmatpush1.bf16.msra.mxu1 %v746_v62  ;;  %v128_v51 = vld [vmem:[#allocation6 + $0x190] sm:$0xff]  ;;  %v133_v58 = vld [vmem:[#allocation6 + $0x1b8] sm:$0xff]  ;;  %v840_v62 = vpack.c.bf16 %v205_v48, %v203_v47  ;;  %v207_v1 = vld [vmem:[#allocation6 + $0x408] sm:$0xff] }
  0x62   :  { %819 = vmatpush1.bf16.msra.mxu0 %v818_v52  ;;  %749 = vmatprep.subr.bf16.mxu1 %v748_v63  ;;  %v926_v52 = vld [vmem:[#allocation3] ss:$10 sps:$4 sm:$0xff]   ;;  %v204_v0 = vld [vmem:[#allocation6 + $0x3f0] sm:$0xff]  ;;  %v135_v9 = vld [vmem:[#allocation6 + $0x1c8] sm:$0xff] }
  0x63   :  { %821 = vmatprep.subr.bf16.mxu0 %v820_v56  ;;  %v927_v53 = vld [vmem:[#allocation3 + $0x14] ss:$10 sps:$4 sm:$0xff]   ;;  %v1118_v60 = vrot.slane %v926_v52, %v1107_v43  ;;  %v202_v63 = vld [vmem:[#allocation6 + $0x3e0] sm:$0xff] }
  0x64   :  { %v131_v56 = vld [vmem:[#allocation6 + $0x1a8] sm:$0xff]  ;;  %v1121_v61 = vrot.slane %v927_v53, %v1107_v43  ;;  %v209_v2 = vld [vmem:[#allocation6 + $0x418] sm:$0xff]  ;;  %v132_v7 = vld [vmem:[#allocation6 + $0x1b0] sm:$0xff]  ;;  %v842_v8 = vpack.c.bf16 %v204_v0, %v202_v63 }
  0x65   :  { %751 = vmatpush1.bf16.msra.mxu1 %v750_v11  ;;  %v768_v5 = vpack.c.bf16 %v133_v58, %v131_v56  ;;  %v137_v10 = vld [vmem:[#allocation6 + $0x1d8] sm:$0xff]  ;;  %v844_v11 = vpack.c.bf16 %v209_v2, %v207_v1  ;;  %v208_v13 = vld [vmem:[#allocation6 + $0x410] sm:$0xff]  ;;  %v211_v14 = vld [vmem:[#allocation6 + $0x428] sm:$0xff] }
  0x66   :  { %823 = vmatpush1.bf16.msra.mxu0 %v822_v3  ;;  %753 = vmatprep.subr.bf16.mxu1 %v752_v12  ;;  %v766_v3 = vpack.c.bf16 %v128_v51, %v126_v49  ;;  %v277_v4 = vcombine.high %v1118_v60, %v1121_v61  ;;  %v206_v12 = vld [vmem:[#allocation6 + $0x400] sm:$0xff]  ;;  %v136_v20 = vld [vmem:[#allocation6 + $0x1d0] sm:$0xff]  ;;  %v139_v22 = vld [vmem:[#allocation6 + $0x1e8] sm:$0xff]  ;;  %v276_v52 = vcombine.low %v1118_v60, %v1121_v61 }
  0x67   :  { %825 = vmatprep.subr.bf16.mxu0 %v824_v6  ;;  %v130_v6 = vld [vmem:[#allocation6 + $0x1a0] sm:$0xff]  ;;  %v846_v21 = vpack.c.bf16 %v208_v13, %v206_v12  ;;  %v212_v26 = vld [vmem:[#allocation6 + $0x430] sm:$0xff]  ;;  %v217_v29 = vld [vmem:[#allocation6 + $0x458] sm:$0xff] }
  0x68   :  { %375 = vmatprep.mubr.f32.mxu1 %v277_v4  ;;  %v770_v16 = vpack.c.bf16 %v132_v7, %v130_v6  ;;  %v134_v19 = vld [vmem:[#allocation6 + $0x1c0] sm:$0xff]  ;;  %v140_v59 = vld [vmem:[#allocation6 + $0x1f0] sm:$0xff]  ;;  %v566_v35 = vld [vmem:[#allocation8 + $0x88] sm:$0xff] }
  0x69   :  { %755 = vmatpush1.bf16.msra.mxu1 %v754_v23  ;;  %v141_v23 = vld [vmem:[#allocation6 + $0x1f8] sm:$0xff]  ;;  %v210_v25 = vld [vmem:[#allocation6 + $0x420] sm:$0xff]  ;;  %v774_v30 = vpack.c.bf16 %v136_v20, %v134_v19  ;;  %v565_v34 = vld [vmem:[#allocation8 + $0x80] sm:$0xff] }
  0x6a   :  { %827 = vmatpush1.bf16.msra.mxu0 %v826_v15  ;;  %757 = vmatprep.subr.bf16.mxu1 %v756_v24  ;;  %v213_v15 = vld [vmem:[#allocation6 + $0x438] sm:$0xff]  ;;  %v138_v55 = vld [vmem:[#allocation6 + $0x1e0] sm:$0xff]  ;;  %v850_v32 = vpack.c.bf16 %v212_v26, %v210_v25  ;;  %v219_v39 = vld [vmem:[#allocation6 + $0x468] sm:$0xff]  ;;  %v872_v42 = vpack.c.bf16 %v566_v35, %v565_v34 }
  0x6b   :  { %829 = vmatprep.subr.bf16.mxu0 %v828_v18  ;;  %v772_v18 = vpack.c.bf16 %v137_v10, %v135_v9  ;;  %v848_v24 = vpack.c.bf16 %v213_v15, %v211_v14  ;;  %v214_v37 = vld [vmem:[#allocation6 + $0x440] sm:$0xff]  ;;  %v221_v40 = vld [vmem:[#allocation6 + $0x478] sm:$0xff]  ;;  %v549_v44 = vld [vmem:[#allocation8] sm:$0xff] }
  0x6c   :  { %v550_v45 = vld [vmem:[#allocation8 + $0x8] sm:$0xff]  ;;  %v567_v47 = vld [vmem:[#allocation8 + $0x90] sm:$0xff]  ;;  %v568_v48 = vld [vmem:[#allocation8 + $0x98] sm:$0xff]  ;;  %v856_v49 = vpack.c.bf16 %v221_v40, %v219_v39 }
  0x6d   :  { %759 = vmatpush1.bf16.msra.mxu1 %v758_v36  ;;  %v220_v51 = vld [vmem:[#allocation6 + $0x470] sm:$0xff]  ;;  %v223_v53 = vld [vmem:[#allocation6 + $0x488] sm:$0xff]  ;;  %v874_v56 = vpack.c.bf16 %v550_v45, %v549_v44  ;;  %v551_v58 = vld [vmem:[#allocation8 + $0x10] sm:$0xff] }
  0x6e   :  { %831 = vmatpush1.bf16.msra.mxu0 %v830_v28  ;;  %761 = vmatprep.subr.bf16.mxu1 %v760_v38  ;;  %v215_v28 = vld [vmem:[#allocation6 + $0x448] sm:$0xff]  ;;  %v216_v38 = vld [vmem:[#allocation6 + $0x450] sm:$0xff]  ;;  %v570_v1 = vld [vmem:[#allocation8 + $0xa8] sm:$0xff] }
  0x6f   :  { %833 = vmatprep.subr.bf16.mxu0 %v832_v31  ;;  %v776_v31 = vpack.c.bf16 %v141_v23, %v139_v22  ;;  %v852_v36 = vpack.c.bf16 %v217_v29, %v215_v28  ;;  %v569_v0 = vld [vmem:[#allocation8 + $0xa0] sm:$0xff]  ;;  %v229_v6 = vld [vmem:[#allocation6 + $0x4b8] sm:$0xff]  ;;  %v571_v10 = vld [vmem:[#allocation8 + $0xb0] sm:$0xff] }
  0x70   :  { %v224_v4 = vld [vmem:[#allocation6 + $0x490] sm:$0xff]  ;;  %v880_v61 = vpack.c.bf16 %v570_v1, %v569_v0  ;;  %v226_v13 = vld [vmem:[#allocation6 + $0x4a0] sm:$0xff]  ;;  %v231_v15 = vld [vmem:[#allocation6 + $0x4c8] sm:$0xff]  ;;  %v541_v1 = vsub.s32 1, %v1104_v27 }
  0x71   :  { %763 = vmatpush1.bf16.msra.mxu1 %v762_v50  ;;  %v218_v50 = vld [vmem:[#allocation6 + $0x460] sm:$0xff]  ;;  %v553_v7 = vld [vmem:[#allocation8 + $0x20] sm:$0xff]  ;;  %v574_v25 = vld [vmem:[#allocation8 + $0xc8] sm:$0xff] }
  0x72   :  { %835 = vmatpush1.bf16.msra.mxu0 %v834_v41  ;;  %765 = vmatprep.subr.bf16.mxu1 %v764_v54  ;;  %v778_v41 = vpack.c.bf16 %v140_v59, %v138_v55  ;;  %v225_v54 = vld [vmem:[#allocation6 + $0x498] sm:$0xff]  ;;  %v858_v63 = vpack.c.bf16 %v220_v51, %v218_v50  ;;  %v228_v14 = vld [vmem:[#allocation6 + $0x4b0] sm:$0xff]  ;;  %v555_v20 = vld [vmem:[#allocation8 + $0x30] sm:$0xff] }
  0x73   :  { %837 = vmatprep.subr.bf16.mxu0 %v836_v46  ;;  %v854_v46 = vpack.c.bf16 %v216_v38, %v214_v37  ;;  %v860_v2 = vpack.c.bf16 %v225_v54, %v223_v53  ;;  %v866_v22 = vpack.c.bf16 %v228_v14, %v226_v13  ;;  %v232_v23 = vld [vmem:[#allocation6 + $0x4d0] sm:$0xff]  ;;  %v928_v28 = vld [vmem:[#allocation3 + $0x8] ss:$10 sps:$4 sm:$0x33]   ;;  %v558_v59 = vld [vmem:[#allocation8 + $0x48] sm:$0xff] }
  0x74   :  { %v929_v29 = vld [vmem:[#allocation3 + $0x1c] ss:$10 sps:$4 sm:$0x33]   ;;  %v576_v34 = vld [vmem:[#allocation8 + $0xd8] sm:$0xff]  ;;  %v288_v35 = vrot.slane %v928_v28, %v1107_v43  ;;  %v559_v40 = vld [vmem:[#allocation8 + $0x50] sm:$0xff] }
  0x75   :  { %767 = vmatpush1.bf16.msra.mxu1 %v766_v3  ;;  %v222_v3 = vld [vmem:[#allocation6 + $0x480] sm:$0xff]  ;;  %v557_v55 = vld [vmem:[#allocation8 + $0x40] sm:$0xff]  ;;  %v235_v37 = vld [vmem:[#allocation6 + $0x4e8] sm:$0x1] }
  0x76   :  { %839 = vmatpush1.bf16.msra.mxu0 %v838_v57  ;;  %769 = vmatprep.subr.bf16.mxu1 %v768_v5  ;;  %v876_v57 = vpack.c.bf16 %v568_v48, %v567_v47  ;;  %v227_v5 = vld [vmem:[#allocation6 + $0x4a8] sm:$0xff]  ;;  %v862_v9 = vpack.c.bf16 %v224_v4, %v222_v3  ;;  %v890_v38 = vpack.c.bf16 %v558_v59, %v557_v55  ;;  %v561_v48 = vld [vmem:[#allocation8 + $0x60] sm:$0xff]  ;;  %v579_v51 = vld [vmem:[#allocation8 + $0xf0] sm:$0xff] }
  0x77   :  { %841 = vmatprep.subr.bf16.mxu0 %v840_v62  ;;  %v552_v62 = vld [vmem:[#allocation8 + $0x18] sm:$0xff]  ;;  %v864_v12 = vpack.c.bf16 %v229_v6, %v227_v5  ;;  %v563_v54 = vld [vmem:[#allocation8 + $0x70] sm:$0xff]  ;;  %v533_v0 = vld [vmem:[%s1153_s2] sm:$0x3] }
  0x78   :  { %v878_v60 = vpack.c.bf16 %v552_v62, %v551_v58  ;;  %v542_v4 = vrot.slane %v533_v0, %v541_v1 }
  0x79   :  { %771 = vmatpush1.bf16.msra.mxu1 %v770_v16  ;;  %v233_v16 = vld [vmem:[#allocation6 + $0x4d8] sm:$0xff] }
  0x7a   :  { %843 = vmatpush1.bf16.msra.mxu0 %v842_v8  ;;  %773 = vmatprep.subr.bf16.mxu1 %v772_v18  ;;  %v554_v8 = vld [vmem:[#allocation8 + $0x28] sm:$0xff]  ;;  %v230_v18 = vld [vmem:[#allocation6 + $0x4c0] sm:$0xff]  ;;  %v868_v26 = vpack.c.bf16 %v233_v16, %v231_v15 }
  0x7b   :  { %845 = vmatprep.subr.bf16.mxu0 %v844_v11  ;;  %v572_v11 = vld [vmem:[#allocation8 + $0xb8] sm:$0xff] }
  0x7c   :  { %v884_v19 = vpack.c.bf16 %v572_v11, %v571_v10  ;;  %v680_v11 = vld [vmem:[%s1155_s4] ss:$0 sm:$0xff] }
  0x7d   :  { %447 = vmatmul.mubr.f32.vlgmr.msra.gmra.mrb[0].mxu0 %v278_v17  ;;  %775 = vmatpush1.bf16.msra.mxu1 %v774_v30  ;;  %v882_v17 = vpack.c.bf16 %v554_v8, %v553_v7 }
  0x7e   :  { %847 = vmatpush1.bf16.msra.mxu0 %v846_v21  ;;  %517 = vmatprep.mubr.f32.mxu0 %v1034_v33  ;;  %v556_v21 = vld [vmem:[#allocation8 + $0x38] sm:$0xff]  ;;  %v575_v33 = vld [vmem:[#allocation8 + $0xd0] sm:$0xff] }
  0x7f   :  { %849 = vmatprep.subr.bf16.mxu0 %v848_v24  ;;  %777 = vmatprep.subr.bf16.mxu1 %v776_v31  ;;  %v573_v24 = vld [vmem:[#allocation8 + $0xc0] sm:$0xff]  ;;  %v886_v30 = vpack.c.bf16 %v556_v21, %v555_v20  ;;  %v892_v39 = vpack.c.bf16 %v576_v34, %v575_v33 }
  0x80   :  { %v888_v31 = vpack.c.bf16 %v574_v25, %v573_v24 }
  0x81   :  { %779 = vmatpush1.bf16.msra.mxu1 %v778_v41  ;;  %v560_v41 = vld [vmem:[#allocation8 + $0x58] sm:$0xff] }
  0x82   :  { %851 = vmatpush1.bf16.msra.mxu0 %v850_v32  ;;  %873 = vmatprep.subr.bf16.mxu1 %v872_v42  ;;  %v870_v32 = vpack.c.bf16 %v232_v23, %v230_v18  ;;  %v234_v42 = vld [vmem:[#allocation6 + $0x4e0] sm:$0x1]  ;;  %v894_v45 = vpack.c.bf16 %v560_v41, %v559_v40 }
  0x83   :  { %853 = vmatprep.subr.bf16.mxu0 %v852_v36  ;;  %v295_v36 = vrot.slane %v929_v29, %v1107_v43  ;;  %v577_v43 = vld [vmem:[#allocation8 + $0xe0] sm:$0xff] }
  0x84   :  { %376 = vmatmul.mubr.f32.vlgmr.msra.gmra.mrb[0].mxu1 %v276_v52  ;;  %v580_v52 = vld [vmem:[#allocation8 + $0xf8] sm:$0xff] }
  0x85   :  { %875 = vmatpush3.bf16.msra.mxu1 %v874_v56  ;;  %v296_v44 = vcombine.low %v288_v35, %v295_v36  ;;  %v900_v53 = vpack.c.bf16 %v580_v52, %v579_v51  ;;  %v564_v56 = vld [vmem:[#allocation8 + $0x78] sm:$0xff] }
  0x86   :  { %855 = vmatpush1.bf16.msra.mxu0 %v854_v46  ;;  %877 = vmatprep.subr.bf16.mxu1 %v876_v57  ;;  %v578_v46 = vld [vmem:[#allocation8 + $0xe8] sm:$0xff]  ;;  %v902_v57 = vpack.c.bf16 %v564_v56, %v563_v54 }
  0x87   :  { %857 = vmatprep.subr.bf16.mxu0 %v856_v49  ;;  %v896_v47 = vpack.c.bf16 %v578_v46, %v577_v43  ;;  %v562_v49 = vld [vmem:[#allocation8 + $0x68] sm:$0xff] }
  0x88   :  { %v898_v50 = vpack.c.bf16 %v562_v49, %v561_v48 }
  0x89   :  { %879 = vmatpush3.bf16.msra.mxu1 %v878_v60 }
  0x8a   :  { %859 = vmatpush1.bf16.msra.mxu0 %v858_v63  ;;  %881 = vmatprep.subr.bf16.mxu1 %v880_v61  ;;  %v537_v63 = vsub.s32 0, %v1104_v27 }
  0x8b   :  { %861 = vmatprep.subr.bf16.mxu0 %v860_v2 }
  0x8c   :  { %v538_v2 = vrot.slane %v533_v0, %v537_v63 }
  0x8d   :  { %883 = vmatpush3.bf16.msra.mxu1 %v882_v17 }
  0x8e   :  { %863 = vmatpush1.bf16.msra.mxu0 %v862_v9  ;;  %885 = vmatprep.subr.bf16.mxu1 %v884_v19 }
  0x8f   :  { %865 = vmatprep.subr.bf16.mxu0 %v864_v12 }
  0x91   :  { %887 = vmatpush3.bf16.msra.mxu1 %v886_v30 }
  0x92   :  { %867 = vmatpush1.bf16.msra.mxu0 %v866_v22  ;;  %889 = vmatprep.subr.bf16.mxu1 %v888_v31 }
  0x93   :  { %869 = vmatprep.subr.bf16.mxu0 %v868_v26 }
  0x95   :  { %891 = vmatpush3.bf16.msra.mxu1 %v890_v38 }
  0x96   :  { %871 = vmatpush1.bf16.msra.mxu0 %v870_v32  ;;  %893 = vmatprep.subr.bf16.mxu1 %v892_v39 }
  0x97   :  { %677 = vmatprep.subr.msk.mxu0 %vm304_vm0, %v235_v37 }
  0x99   :  { %895 = vmatpush3.bf16.msra.mxu1 %v894_v45 }
  0x9a   :  { %678 = vmatpush1.msk.msra.mxu0 %vm304_vm0, %v234_v42  ;;  %897 = vmatprep.subr.bf16.mxu1 %v896_v47 }
  0x9b   :  { %679 = vmatmul.mubr.msk.f32.vlgmr.msra.gmra.mrb[0].mxu0 %vm301_vm1, %v296_v44 }
  0x9d   :  { %899 = vmatpush3.bf16.msra.mxu1 %v898_v50 }
  0x9e   :  { %901 = vmatprep.subr.bf16.mxu1 %v900_v53 }
  0xa1   :  { %903 = vmatpush3.bf16.msra.mxu1 %v902_v57 }
 0x157   :  { %v377_v58 = vpop.f32.mrb[0].mxu1 }
 0x158   :  { %v379_v62 = vpop.f32.mrb[1].mxu1 }
 0x16e   :  { %v519_v3 = vpop.f32.mrb[0].mxu0 }
 0x16f   :  { %v904_v5 = vadd.f32 %v519_v3, %v377_v58  ;;  %v521_v6 = vpop.f32.mrb[1].mxu0 }
 0x170   :  { %v905_v60 = vadd.f32 %v521_v6, %v379_v62 }
 0x171   :  { %v545_v61 = vadd.f32 %v904_v5, %v538_v2 }
 0x172   :  { %v546_v7 = vadd.f32 %v905_v60, %v542_v4 }
 0x173   :  { %v547_v9 = vmax.f32 %v545_v61, 0.0 }
 0x174   :  { %v548_v8 = vmax.f32 %v546_v7, 0.0 }
 0x176   :  { %652 = vmatprep.mubr.f32.mxu1 %v548_v8 }
 0x177   :  { %653 = vmatmul.mubr.f32.vlgmr.msra.gmra.mrb[2].mxu1 %v547_v9 }
 0x24a   :  { %v713_v10 = vpop.f32.mrb[2].mxu1 }
 0x24b   :  { %v714_v12 = vpop.f32.mrb[3].mxu1 }
 0x24c   :  { %v715_v13 = vadd.f32 %v714_v12, %v713_v10 }
 0x24e   :  { %v655_v27 = vadd.f32 %v715_v13, %v680_v11 }
 0x250   :  { %658 = vst [vmem:[#allocation9] sm:$0xff] %v655_v27 }
 0x251   :  { %663 = vsyncadd [#allocation5], 96  ;;  %s1035_s2 = smov [#allocation9]  }
 0x252   :  { %s664_s12 = sshll.u32 %s1035_s2, 4  ;;  %s665_s12 = int_to_ptr.vmem [resolvable:$true] %s664_s12 }
 0x253   :  { %s996_s13 = scalar_lea.vmem %s665_s12, 32  ;;  %s1000_s14 = scalar_lea.vmem %s665_s12, 128 }
 0x254   :  { %p997_p10 = scmp.ne.s32.totalorder %s665_s12, %s996_s13  ;;  %p1001_p11 = scmp.lt.s32.totalorder %s665_s12, %s665_s12 }
 0x255   :  { %p1002_p12 = scmp.lt.s32.totalorder %s1000_s14, %s996_s13 }
 0x257   :  { %p1003_p13 = por %p1002_p12, %p1001_p11 }
 0x259   :  { %p1004_p0 = pnand %p1003_p13, %p997_p10 }
 0x25b   :  { %1007 = shalt.err (!%p1004_p0)
}
 0x25c   :  { %s1008_s4 = scalar_lea.hbm %s1156_s5, 32 }
 0x25d   :  { %p1009_p1 = scmp.ne.s32.totalorder %s1156_s5, %s1008_s4  ;;  %p1012_p2 = scmp.lt.u32.totalorder %s1008_s4, %s1156_s5 }
 0x25f   :  { %p1014_p3 = pnand %p1012_p2, %p1009_p1 }
 0x261   :  { %1017 = shalt.err (!%p1014_p3)
}
 0x262   :  { %s1036_s20 = smov 32   ;;  %s1037_s21 = smov 2  }
 0x263   :  { %670 = dma.vmem_to_hbm [thread:$0]  %s665_s12, 32, %s1156_s5, [#allocation5], %s1036_s20, %s1036_s20, %s1037_s21  }
 0x264   :  { %1022 = dma.done.wait [#allocation5], 128  }
 0x265   :  { %1023 = vsyncadd [#allocation5], 4294967168 }
 0x266   :  { %674 = vsyncpa [#allocation4], 1 }
 0x267   :  { %675 = vsyncpa [#allocation7], 1 }
 0x268   :  { %676 = vsyncpa [#allocation5], 1 }

</bundles_post_ra>
